<compile_context>
chip_gen: v6e
topology: v6e:2x2x1
jax: 0.10.0
libtpu: 0.0.40
codegen_flags: <defaults>
</compile_context>

<pallas_src>
import math
from functools import partial

import jax
import jax.numpy as jnp
from jax import lax
from jax.experimental import pallas as pl
from jax.experimental.pallas import tpu as pltpu

_MASK_VALUE = -1e30                       # large finite negative (bf16-safe)
_VMEM_LIMIT = 48 * 1024 * 1024            # < v7x 64 MiB physical, > scoped defaults


def _pick_tile(n, target, align):
    """Largest multiple of `align` that divides `n` and is <= `target`, else n (full)."""
    if n <= target:
        return n
    t = (target // align) * align
    while t >= align:
        if n % t == 0:
            return t
        t -= align
    return n


# --------------------------------------------------------------------------
# Kernel 1: Q/K/V projections.  Large row tiles over flattened (B*T) tokens,
# column-tiled weights.  Scale folded into Q here (not per-score).
# --------------------------------------------------------------------------
def _qkv_proj_kernel(x_ref, wq_ref, wk_ref, wv_ref, bq_ref, bk_ref, bv_ref,
                     q_ref, k_ref, v_ref, *, scale):
    # TODO(synk): for very large d_in add a contraction grid axis with an f32
    # VMEM accumulator instead of keeping the full d_in extent in one block.
    x = x_ref[...]
    q = jnp.dot(x, wq_ref[...], preferred_element_type=jnp.float32) + bq_ref[...]
    k = jnp.dot(x, wk_ref[...], preferred_element_type=jnp.float32) + bk_ref[...]
    v = jnp.dot(x, wv_ref[...], preferred_element_type=jnp.float32) + bv_ref[...]
    q_ref[...] = (q * scale).astype(q_ref.dtype)     # 1/sqrt(head_dim) applied once
    k_ref[...] = k.astype(k_ref.dtype)
    v_ref[...] = v.astype(v_ref.dtype)


# --------------------------------------------------------------------------
# Kernel 2: flash attention (online softmax, causal) + output projection.
# Grid = (batch, flat triangular step); (qi, ki) come from scalar-prefetch
# tables, so no ki>qi steps exist at all.
# --------------------------------------------------------------------------
def _flash_attn_kernel(qi_map_ref, ki_map_ref,
                       q_ref, k_ref, v_ref, wo_ref, bo_ref, o_ref,
                       m_sc, l_sc, acc_sc, *, num_heads, head_dim):
    s_idx = pl.program_id(1)
    qi = qi_map_ref[s_idx]
    ki = ki_map_ref[s_idx]
    tq = q_ref.shape[1]
    tk = k_ref.shape[1]

    @pl.when(ki == 0)
    def _init():
        m_sc[...] = jnp.full_like(m_sc, _MASK_VALUE)
        l_sc[...] = jnp.zeros_like(l_sc)
        acc_sc[...] = jnp.zeros_like(acc_sc)

    def _attn_block(keep_mask):
        # q already carries the 1/sqrt(head_dim) scale (applied in kernel 1).
        q = q_ref[0]                       # (tq, d_out)  bf16, lane-dense
        k = k_ref[0]                       # (tk, d_out)
        v = v_ref[0]
        pv_parts = []
        alpha_parts = []
        # TODO(synk): for num_heads >= 8 with 128x128 tiles move heads to a
        # grid axis (or 128-lane head groups) to bound vreg live ranges.
        for h in range(num_heads):         # static unroll
            lo, hi = h * head_dim, (h + 1) * head_dim
            s = lax.dot_general(q[:, lo:hi], k[:, lo:hi],
                                (((1,), (1,)), ((), ())),
                                preferred_element_type=jnp.float32)   # (tq, tk)
            if keep_mask is not None:      # mask only built on the diagonal tile
                s = jnp.where(keep_mask, s, _MASK_VALUE)
            # m/l are stored lane-wide (value replicated over 128 lanes) so the
            # scratch loads/stores below are full-vreg and unmasked.
            m_prev = m_sc[h]                                   # (tq, 128)
            l_prev = l_sc[h]
            m_new = jnp.maximum(m_prev, jnp.max(s, axis=-1, keepdims=True))
            m_sc[h] = m_new
            m_new1 = m_new[:, :1]                              # (tq, 1)
            alpha = jnp.exp(m_prev[:, :1] - m_new1)            # (tq, 1)
            p = jnp.exp(s - m_new1)                            # (tq, tk) f32
            l_sc[h] = alpha * l_prev + jnp.sum(p, axis=-1, keepdims=True)
            pv_parts.append(jnp.dot(p.astype(v.dtype), v[:, lo:hi],
                                    preferred_element_type=jnp.float32))
            alpha_parts.append(jnp.broadcast_to(alpha, (tq, head_dim)))
        # Single lane-dense accumulator update per kv step (no per-head
        # partial-width masked read-modify-writes).
        pv = jnp.concatenate(pv_parts, axis=-1)                # (tq, d_out) f32
        alpha_full = jnp.concatenate(alpha_parts, axis=-1)     # (tq, d_out) f32
        acc_sc[...] = alpha_full * acc_sc[...] + pv

    # Interior kv tiles: fully unmasked (no iota / no where).
    @pl.when(ki < qi)
    def _interior():
        _attn_block(None)

    # Diagonal tile: apply the causal mask, then finalize.
    @pl.when(ki == qi)
    def _diag_and_finalize():
        row = lax.broadcasted_iota(jnp.int32, (tq, tk), 0)
        col = lax.broadcasted_iota(jnp.int32, (tq, tk), 1)
        _attn_block(col <= row)            # tq == tk -> tile-local causal mask

        # TODO(synk): dropout on attention weights is identity (eval mode);
        # training parity would need pltpu.prng_seed/prng_random_bits here.

        # Epilogue: softmax normalization (EUP vrcp) + output projection,
        # one lane-dense unmasked store per (b, q-tile).
        inv_parts = [jnp.broadcast_to(
            pl.reciprocal(l_sc[h][:, :1], approx=True), (tq, head_dim))
            for h in range(num_heads)]
        inv_full = jnp.concatenate(inv_parts, axis=-1)         # (tq, d_out)
        ctx = (acc_sc[...] * inv_full).astype(wo_ref.dtype)
        # TODO(synk): for d_out >= 2048 on v7x, tile wo along output columns
        # (or split the output projection into its own call) instead of
        # keeping the full (d_out, d_out) weight VMEM-resident.
        out = jnp.dot(ctx, wo_ref[...], preferred_element_type=jnp.float32)
        o_ref[0] = (out + bo_ref[...]).astype(o_ref.dtype)


# --------------------------------------------------------------------------
# Wrapper
# --------------------------------------------------------------------------
def multi_head_attention(x, params, *, num_heads: int, block_size: int = 256,
                         compute_dtype=jnp.bfloat16):
    """x: (B, T, d_in).  params: dict of weights [in, out] / biases [out].

    block_size: attention tile target (256 for v6e/v7x; 128 is enough on v5e).
    compute_dtype: MXU dtype for x / weights / Q-K-V (default bf16);
                   accumulation and softmax state stay f32.
    """
    B, T, d_in = x.shape
    d_out = params['wq'].shape[1]
    assert d_out % num_heads == 0
    head_dim = d_out // num_heads
    scale = 1.0 / math.sqrt(head_dim)
    out_dtype = x.dtype
    c_size = jnp.dtype(compute_dtype).itemsize

    # Weights in compute dtype (bf16 MXU path); biases kept f32 (added after
    # the f32-accumulated dot, negligible size).
    wq = params['wq'].astype(compute_dtype)
    wk = params['wk'].astype(compute_dtype)
    wv = params['wv'].astype(compute_dtype)
    wo = params['wo'].astype(compute_dtype)
    bq = params['bq'].reshape(1, d_out).astype(jnp.float32)
    bk = params['bk'].reshape(1, d_out).astype(jnp.float32)
    bv = params['bv'].reshape(1, d_out).astype(jnp.float32)
    bo = params['bo'].reshape(1, d_out).astype(jnp.float32)

    # ---- kernel 1: Q/K/V projection (big token tiles, tiled weights) ------
    rows = B * T
    x2 = x.reshape(rows, d_in).astype(compute_dtype)
    tm = _pick_tile(rows, 512, 8)          # projection row tile (decoupled, large)
    tn = _pick_tile(d_out, 512, 128)       # weight / output column tile
    grid1 = (rows // tm, d_out // tn)

    q2, k2, v2 = pl.pallas_call(
        partial(_qkv_proj_kernel, scale=scale),
        out_shape=tuple(jax.ShapeDtypeStruct((rows, d_out), compute_dtype)
                        for _ in range(3)),
        grid_spec=pltpu.PrefetchScalarGridSpec(
            num_scalar_prefetch=0,
            grid=grid1,
            in_specs=[
                pl.BlockSpec((tm, d_in), lambda m, n: (m, 0)),
                pl.BlockSpec((d_in, tn), lambda m, n: (0, n)),
                pl.BlockSpec((d_in, tn), lambda m, n: (0, n)),
                pl.BlockSpec((d_in, tn), lambda m, n: (0, n)),
                pl.BlockSpec((1, tn), lambda m, n: (0, n)),
                pl.BlockSpec((1, tn), lambda m, n: (0, n)),
                pl.BlockSpec((1, tn), lambda m, n: (0, n)),
            ],
            out_specs=[pl.BlockSpec((tm, tn), lambda m, n: (m, n))] * 3,
        ),
        compiler_params=pltpu.CompilerParams(
            dimension_semantics=("parallel", "parallel"),
            vmem_limit_bytes=_VMEM_LIMIT),
        cost_estimate=pl.CostEstimate(
            flops=2 * rows * d_in * 3 * d_out,
            transcendentals=0,
            bytes_accessed=(rows * d_in * max(1, d_out // tn)
                            + 3 * d_in * d_out + 3 * rows * d_out) * c_size
                           + 3 * d_out * 4),
    )(x2, wq, wk, wv, bq, bk, bv)

    q3 = q2.reshape(B, T, d_out)           # metadata-only reshapes
    k3 = k2.reshape(B, T, d_out)
    v3 = v2.reshape(B, T, d_out)

    # ---- kernel 2: flash attention (triangular grid) + output projection --
    tile = _pick_tile(T, block_size, 8)
    nt = T // tile
    qi_list, ki_list = [], []
    for qib in range(nt):                  # flat step -> (qi, ki<=qi)
        for kib in range(qib + 1):
            qi_list.append(qib)
            ki_list.append(kib)
    n_flat = len(qi_list)
    qi_map = jnp.asarray(qi_list, dtype=jnp.int32)
    ki_map = jnp.asarray(ki_list, dtype=jnp.int32)

    kernel = partial(_flash_attn_kernel, num_heads=num_heads, head_dim=head_dim)
    kv_bytes = B * n_flat * tile * d_out * c_size        # per K and per V
    out = pl.pallas_call(
        kernel,
        out_shape=jax.ShapeDtypeStruct((B, T, d_out), out_dtype),
        grid_spec=pltpu.PrefetchScalarGridSpec(
            num_scalar_prefetch=2,
            grid=(B, n_flat),
            in_specs=[
                # Q tile: constant across a qi-group -> DMA'd once per q tile.
                pl.BlockSpec((1, tile, d_out),
                             lambda b, s, qm, km: (b, qm[s], 0)),
                pl.BlockSpec((1, tile, d_out),
                             lambda b, s, qm, km: (b, km[s], 0)),
                pl.BlockSpec((1, tile, d_out),
                             lambda b, s, qm, km: (b, km[s], 0)),
                pl.BlockSpec((d_out, d_out), lambda b, s, qm, km: (0, 0)),
                pl.BlockSpec((1, d_out), lambda b, s, qm, km: (0, 0)),
            ],
            out_specs=pl.BlockSpec((1, tile, d_out),
                                   lambda b, s, qm, km: (b, qm[s], 0)),
            scratch_shapes=[
                pltpu.VMEM((num_heads, tile, 128), jnp.float32),  # running max
                pltpu.VMEM((num_heads, tile, 128), jnp.float32),  # running sum
                pltpu.VMEM((tile, d_out), jnp.float32),           # ctx accumulator
            ],
        ),
        compiler_params=pltpu.CompilerParams(
            # Leading batch axis stays "parallel" so both v7x TCs get work.
            dimension_semantics=("parallel", "arbitrary"),
            vmem_limit_bytes=_VMEM_LIMIT),
        cost_estimate=pl.CostEstimate(
            flops=4 * B * n_flat * tile * tile * d_out        # QK^T + PV (causal)
                  + 2 * B * T * d_out * d_out,                # output projection
            transcendentals=B * n_flat * num_heads * tile * tile,
            bytes_accessed=B * T * d_out * c_size + 2 * kv_bytes
                           + d_out * d_out * c_size + d_out * 4
                           + B * T * d_out * jnp.dtype(out_dtype).itemsize),
    )(qi_map, ki_map, q3, k3, v3, wo, bo)
    return out


# --------------------------------------------------------------------------
# Pure-JAX reference (matches the intended PyTorch forward; inputs rounded to
# the kernel's compute dtype so the comparison isolates structural errors)
# --------------------------------------------------------------------------
def _reference(x, params, num_heads, compute_dtype=jnp.bfloat16):
    r = lambda a: a.astype(compute_dtype).astype(jnp.float32)
    B, T, d_in = x.shape
    d_out = params['wq'].shape[1]
    hd = d_out // num_heads
    xr = r(x)
    q = xr @ r(params['wq']) + params['bq']
    k = xr @ r(params['wk']) + params['bk']
    v = xr @ r(params['wv']) + params['bv']
    q = q.reshape(B, T, num_heads, hd).transpose(0, 2, 1, 3)
    k = k.reshape(B, T, num_heads, hd).transpose(0, 2, 1, 3)
    v = v.reshape(B, T, num_heads, hd).transpose(0, 2, 1, 3)
    scores = jnp.einsum('bhqd,bhkd->bhqk', q, k)
    mask = jnp.triu(jnp.ones((T, T), dtype=bool), k=1)
    scores = jnp.where(mask, -jnp.inf, scores)
    w = jax.nn.softmax(scores / math.sqrt(hd), axis=-1)
    ctx = jnp.einsum('bhqk,bhkd->bhqd', w, v).transpose(0, 2, 1, 3)
    ctx = ctx.reshape(B, T, d_out)
    return ctx @ r(params['wo']) + params['bo']


if __name__ == "__main__":
    B, T = 2, 8
    d_in, d_out, num_heads = 32, 32, 4

    key = jax.random.PRNGKey(0)
    ks = jax.random.split(key, 9)
    si = 1.0 / math.sqrt(d_in)
    so = 1.0 / math.sqrt(d_out)
    params = {
        'wq': jax.random.uniform(ks[0], (d_in, d_out), jnp.float32, -si, si),
        'bq': jax.random.uniform(ks[1], (d_out,), jnp.float32, -si, si),
        'wk': jax.random.uniform(ks[2], (d_in, d_out), jnp.float32, -si, si),
        'bk': jax.random.uniform(ks[3], (d_out,), jnp.float32, -si, si),
        'wv': jax.random.uniform(ks[4], (d_in, d_out), jnp.float32, -si, si),
        'bv': jax.random.uniform(ks[5], (d_out,), jnp.float32, -si, si),
        'wo': jax.random.uniform(ks[6], (d_out, d_out), jnp.float32, -so, so),
        'bo': jax.random.uniform(ks[7], (d_out,), jnp.float32, -so, so),
    }
    x = jax.random.normal(ks[8], (B, T, d_in), jnp.float32)

    out = jax.block_until_ready(
        multi_head_attention(x, params, num_heads=num_heads))

    ref = _reference(x, params, num_heads)
    assert out.shape == (B, T, d_out)
    # Tolerance accommodates bf16 MXU compute (bf16-rounded intermediates,
    # bf16 P@V / ctx casts) and the approximate EUP reciprocal; structural
    # errors would be O(1).
    assert jnp.allclose(out, ref, atol=3e-2, rtol=3e-2), "mismatch vs reference"
    print("KERNEL_OK")
</pallas_src>

<mosaic_0001>
module attributes {stable_mosaic.version = 11 : i64} {
  func.func @_qkv_proj_kernel(%arg0: i32, %arg1: i32, %arg2: memref<16x32xbf16, #tpu.memory_space<vmem>>, %arg3: memref<32x32xbf16, #tpu.memory_space<vmem>>, %arg4: memref<32x32xbf16, #tpu.memory_space<vmem>>, %arg5: memref<32x32xbf16, #tpu.memory_space<vmem>>, %arg6: memref<1x32xf32, #tpu.memory_space<vmem>>, %arg7: memref<1x32xf32, #tpu.memory_space<vmem>>, %arg8: memref<1x32xf32, #tpu.memory_space<vmem>>, %arg9: memref<16x32xbf16, #tpu.memory_space<vmem>>, %arg10: memref<16x32xbf16, #tpu.memory_space<vmem>>, %arg11: memref<16x32xbf16, #tpu.memory_space<vmem>>) attributes {dimension_semantics = [#tpu.dimension_semantics<parallel>, #tpu.dimension_semantics<parallel>], iteration_bounds = array<i64: 1, 1>, scalar_prefetch = 0 : i64, scratch_operands = 0 : i64, tpu.core_type = #tpu.core_type<tc>, window_params = [{transform_indices = @transform_0, window_bounds = array<i64: 16, 32>}, {transform_indices = @transform_1, window_bounds = array<i64: 32, 32>}, {transform_indices = @transform_2, window_bounds = array<i64: 32, 32>}, {transform_indices = @transform_3, window_bounds = array<i64: 32, 32>}, {transform_indices = @transform_4, window_bounds = array<i64: 1, 32>}, {transform_indices = @transform_5, window_bounds = array<i64: 1, 32>}, {transform_indices = @transform_6, window_bounds = array<i64: 1, 32>}, {transform_indices = @transform_7, window_bounds = array<i64: 16, 32>}, {transform_indices = @transform_8, window_bounds = array<i64: 16, 32>}, {transform_indices = @transform_9, window_bounds = array<i64: 16, 32>}]} {
    %c0 = arith.constant 0 : index
    %c0_0 = arith.constant 0 : index
    %0 = vector.load %arg2[%c0, %c0_0] : memref<16x32xbf16, #tpu.memory_space<vmem>>, vector<16x32xbf16>
    %c0_1 = arith.constant 0 : index
    %c0_2 = arith.constant 0 : index
    %1 = vector.load %arg3[%c0_1, %c0_2] : memref<32x32xbf16, #tpu.memory_space<vmem>>, vector<32x32xbf16>
    %cst = arith.constant dense<0.000000e+00> : vector<16x32xf32>
    %2 = tpu.matmul %0, %1, %cst {dimension_numbers = #tpu.dot_dimension_numbers<[1], [0], [0], [1], [0, 0, 1, 1], [], []>} : vector<16x32xbf16>, vector<32x32xbf16>, vector<16x32xf32> -> vector<16x32xf32>
    %c0_3 = arith.constant 0 : index
    %c0_4 = arith.constant 0 : index
    %3 = vector.load %arg6[%c0_3, %c0_4] : memref<1x32xf32, #tpu.memory_space<vmem>>, vector<1x32xf32>
    %4 = vector.broadcast %3 : vector<1x32xf32> to vector<16x32xf32>
    %5 = arith.addf %2, %4 : vector<16x32xf32>
    %c0_5 = arith.constant 0 : index
    %c0_6 = arith.constant 0 : index
    %6 = vector.load %arg4[%c0_5, %c0_6] : memref<32x32xbf16, #tpu.memory_space<vmem>>, vector<32x32xbf16>
    %cst_7 = arith.constant dense<0.000000e+00> : vector<16x32xf32>
    %7 = tpu.matmul %0, %6, %cst_7 {dimension_numbers = #tpu.dot_dimension_numbers<[1], [0], [0], [1], [0, 0, 1, 1], [], []>} : vector<16x32xbf16>, vector<32x32xbf16>, vector<16x32xf32> -> vector<16x32xf32>
    %c0_8 = arith.constant 0 : index
    %c0_9 = arith.constant 0 : index
    %8 = vector.load %arg7[%c0_8, %c0_9] : memref<1x32xf32, #tpu.memory_space<vmem>>, vector<1x32xf32>
    %9 = vector.broadcast %8 : vector<1x32xf32> to vector<16x32xf32>
    %10 = arith.addf %7, %9 : vector<16x32xf32>
    %c0_10 = arith.constant 0 : index
    %c0_11 = arith.constant 0 : index
    %11 = vector.load %arg5[%c0_10, %c0_11] : memref<32x32xbf16, #tpu.memory_space<vmem>>, vector<32x32xbf16>
    %cst_12 = arith.constant dense<0.000000e+00> : vector<16x32xf32>
    %12 = tpu.matmul %0, %11, %cst_12 {dimension_numbers = #tpu.dot_dimension_numbers<[1], [0], [0], [1], [0, 0, 1, 1], [], []>} : vector<16x32xbf16>, vector<32x32xbf16>, vector<16x32xf32> -> vector<16x32xf32>
    %c0_13 = arith.constant 0 : index
    %c0_14 = arith.constant 0 : index
    %13 = vector.load %arg8[%c0_13, %c0_14] : memref<1x32xf32, #tpu.memory_space<vmem>>, vector<1x32xf32>
    %14 = vector.broadcast %13 : vector<1x32xf32> to vector<16x32xf32>
    %15 = arith.addf %12, %14 : vector<16x32xf32>
    %cst_15 = arith.constant 0.353553385 : f32
    %16 = vector.broadcast %cst_15 : f32 to vector<16x32xf32>
    %17 = arith.mulf %5, %16 : vector<16x32xf32>
    %18 = arith.truncf %17 : vector<16x32xf32> to vector<16x32xbf16>
    %c0_16 = arith.constant 0 : index
    %c0_17 = arith.constant 0 : index
    %19 = vector.load %arg9[%c0_16, %c0_17] : memref<16x32xbf16, #tpu.memory_space<vmem>>, vector<16x32xbf16>
    tpu.vector_store %arg9[%c0_16, %c0_17], %18 {strides = array<i32>} : memref<16x32xbf16, #tpu.memory_space<vmem>>, vector<16x32xbf16>,
    %20 = arith.truncf %10 : vector<16x32xf32> to vector<16x32xbf16>
    %c0_18 = arith.constant 0 : index
    %c0_19 = arith.constant 0 : index
    %21 = vector.load %arg10[%c0_18, %c0_19] : memref<16x32xbf16, #tpu.memory_space<vmem>>, vector<16x32xbf16>
    tpu.vector_store %arg10[%c0_18, %c0_19], %20 {strides = array<i32>} : memref<16x32xbf16, #tpu.memory_space<vmem>>, vector<16x32xbf16>,
    %22 = arith.truncf %15 : vector<16x32xf32> to vector<16x32xbf16>
    %c0_20 = arith.constant 0 : index
    %c0_21 = arith.constant 0 : index
    %23 = vector.load %arg11[%c0_20, %c0_21] : memref<16x32xbf16, #tpu.memory_space<vmem>>, vector<16x32xbf16>
    tpu.vector_store %arg11[%c0_20, %c0_21], %22 {strides = array<i32>} : memref<16x32xbf16, #tpu.memory_space<vmem>>, vector<16x32xbf16>,
    return
  }
  func.func @transform_0(%arg0: i32, %arg1: i32) -> (i32, i32) {
    %c0_i32 = arith.constant 0 : i32
    %c0_i32_0 = arith.constant 0 : i32
    return %arg0, %c0_i32 : i32, i32
  }
  func.func @transform_1(%arg0: i32, %arg1: i32) -> (i32, i32) {
    %c0_i32 = arith.constant 0 : i32
    %c0_i32_0 = arith.constant 0 : i32
    return %c0_i32, %arg1 : i32, i32
  }
  func.func @transform_2(%arg0: i32, %arg1: i32) -> (i32, i32) {
    %c0_i32 = arith.constant 0 : i32
    %c0_i32_0 = arith.constant 0 : i32
    return %c0_i32, %arg1 : i32, i32
  }
  func.func @transform_3(%arg0: i32, %arg1: i32) -> (i32, i32) {
    %c0_i32 = arith.constant 0 : i32
    %c0_i32_0 = arith.constant 0 : i32
    return %c0_i32, %arg1 : i32, i32
  }
  func.func @transform_4(%arg0: i32, %arg1: i32) -> (i32, i32) {
    %c0_i32 = arith.constant 0 : i32
    %c0_i32_0 = arith.constant 0 : i32
    return %c0_i32, %arg1 : i32, i32
  }
  func.func @transform_5(%arg0: i32, %arg1: i32) -> (i32, i32) {
    %c0_i32 = arith.constant 0 : i32
    %c0_i32_0 = arith.constant 0 : i32
    return %c0_i32, %arg1 : i32, i32
  }
  func.func @transform_6(%arg0: i32, %arg1: i32) -> (i32, i32) {
    %c0_i32 = arith.constant 0 : i32
    %c0_i32_0 = arith.constant 0 : i32
    return %c0_i32, %arg1 : i32, i32
  }
  func.func @transform_7(%arg0: i32, %arg1: i32) -> (i32, i32) {
    %c0_i32 = arith.constant 0 : i32
    return %arg0, %arg1 : i32, i32
  }
  func.func @transform_8(%arg0: i32, %arg1: i32) -> (i32, i32) {
    %c0_i32 = arith.constant 0 : i32
    return %arg0, %arg1 : i32, i32
  }
  func.func @transform_9(%arg0: i32, %arg1: i32) -> (i32, i32) {
    %c0_i32 = arith.constant 0 : i32
    return %arg0, %arg1 : i32, i32
  }
}

</mosaic_0001>

<bundles_post_ra>
// kernel: tpu_custom_call.1
= control target key start
LH: loop header
LB: loop body
LE: loop exit
PB: predicated region body
PF: predicated region fallthrough
CT: control target
= control target key end

     0   :  { %15 = vsyncpa [#allocation3], 0  ;;  %s720_s0 = inlined_call_operand.hbm [shape: bf16[16,32], index: 0, kind: input, shape index: {}]   ;;  %s721_s1 = inlined_call_operand.hbm [shape: bf16[32,32], index: 1, kind: input, shape index: {}]   ;;  %s722_s2 = inlined_call_operand.hbm [shape: bf16[32,32], index: 2, kind: input, shape index: {}]   ;;  %s723_s3 = inlined_call_operand.hbm [shape: bf16[32,32], index: 3, kind: input, shape index: {}]   ;;  %s724_s4 = inlined_call_operand.vmem [shape: f32[1,32], index: 4, kind: input, shape index: {}]   ;;  %s725_s5 = inlined_call_operand.vmem [shape: f32[1,32], index: 5, kind: input, shape index: {}]   ;;  %s726_s6 = inlined_call_operand.vmem [shape: f32[1,32], index: 6, kind: input, shape index: {}]   ;;  %s727_s7 = inlined_call_operand.hbm [shape: bf16[16,32], index: 7, kind: output, shape index: {0}]   ;;  %s728_s8 = inlined_call_operand.hbm [shape: bf16[16,32], index: 8, kind: output, shape index: {1}]   ;;  %s729_s9 = inlined_call_operand.hbm [shape: bf16[16,32], index: 9, kind: output, shape index: {2}]  }
   0x1   :  { %16 = vsyncpa [#allocation6], 0 }
   0x2   :  { %17 = vsyncpa [#allocation9], 0 }
   0x3   :  { %18 = vsyncpa [#allocation4], 0 }
   0x4   :  { %19 = vsyncpa [#allocation12], 0  ;;  %s599_s30 = smov [#allocation5]   ;;  %s600_s11 = smov [#allocation2]  }
   0x5   :  { %s37_s10 = sshll.u32 %s599_s30, 4  ;;  %s25_s12 = sshll.u32 %s600_s11, 4  ;;  %s38_s10 = int_to_ptr.vmem [resolvable:$true] %s37_s10  ;;  %s26_s12 = int_to_ptr.vmem [resolvable:$true] %s25_s12 }
   0x6   :  { %s457_s13 = scalar_lea.vmem %s38_s10, 256  ;;  %p462_p1 = scmp.lt.s32.totalorder %s38_s10, %s38_s10 }
   0x7   :  { %p458_p0 = scmp.ne.s32.totalorder %s38_s10, %s457_s13  ;;  %p463_p2 = scmp.lt.s32.totalorder %s457_s13, %s457_s13 }
   0x9   :  { %p464_p3 = por %p463_p2, %p462_p1 }
   0xb   :  { %p465_p4 = pnand %p464_p3, %p458_p0 }
   0xd   :  { %468 = shalt.err (!%p465_p4)
}
   0xe   :  { %s601_s14 = smov 64   ;;  %s602_s15 = smov 4  }
   0xf   :  { %43 = dma.hbm_to_vmem [thread:$0]  %s721_s1, 256, %s38_s10, [#allocation6], %s601_s14, %s601_s14, %s602_s15  }
  0x10   :  { %s477_s18 = scalar_lea.vmem %s26_s12, 128  ;;  %p482_p6 = scmp.lt.s32.totalorder %s26_s12, %s26_s12 }
  0x11   :  { %p478_p5 = scmp.ne.s32.totalorder %s26_s12, %s477_s18  ;;  %p483_p7 = scmp.lt.s32.totalorder %s477_s18, %s477_s18 }
  0x13   :  { %p484_p8 = por %p483_p7, %p482_p6 }
  0x15   :  { %p485_p9 = pnand %p484_p8, %p478_p5 }
  0x17   :  { %488 = shalt.err (!%p485_p9)
}
  0x18   :  { %31 = dma.hbm_to_vmem [thread:$0]  %s720_s0, 128, %s26_s12, [#allocation3], %s601_s14, %s601_s14, %s602_s15  }
  0x19   :  { %s603_s21 = smov [#allocation7]   ;;  %s604_s23 = smov [#allocation8]  }
  0x1a   :  { %s49_s22 = sshll.u32 %s603_s21, 4  ;;  %s61_s24 = sshll.u32 %s604_s23, 4  ;;  %s50_s22 = int_to_ptr.vmem [resolvable:$true] %s49_s22  ;;  %s62_s24 = int_to_ptr.vmem [resolvable:$true] %s61_s24 }
  0x1b   :  { %s497_s1 = scalar_lea.vmem %s50_s22, 256  ;;  %p502_p11 = scmp.lt.s32.totalorder %s50_s22, %s50_s22 }
  0x1c   :  { %p498_p10 = scmp.ne.s32.totalorder %s50_s22, %s497_s1  ;;  %p503_p12 = scmp.lt.s32.totalorder %s497_s1, %s497_s1 }
  0x1e   :  { %p504_p13 = por %p503_p12, %p502_p11 }
  0x20   :  { %p505_p0 = pnand %p504_p13, %p498_p10 }
  0x22   :  { %508 = shalt.err (!%p505_p0)
}
  0x23   :  { %55 = dma.hbm_to_vmem [thread:$0]  %s722_s2, 256, %s50_s22, [#allocation6], %s601_s14, %s601_s14, %s602_s15  }
  0x24   :  { %s517_s0 = scalar_lea.vmem %s62_s24, 256  ;;  %p522_p2 = scmp.lt.s32.totalorder %s62_s24, %s62_s24 }
  0x25   :  { %p518_p1 = scmp.ne.s32.totalorder %s62_s24, %s517_s0  ;;  %p523_p3 = scmp.lt.s32.totalorder %s517_s0, %s517_s0 }
  0x27   :  { %p524_p4 = por %p523_p3, %p522_p2 }
  0x29   :  { %p525_p5 = pnand %p524_p4, %p518_p1 }
  0x2b   :  { %528 = shalt.err (!%p525_p5)
}
  0x2c   :  { %67 = dma.hbm_to_vmem [thread:$0]  %s723_s3, 256, %s62_s24, [#allocation9], %s601_s14, %s601_s14, %s602_s15  }
  0x2d   :  { %589 = dma.done.wait [#allocation3], 128  }
  0x2e   :  { %590 = vsyncadd [#allocation3], 4294967168 }
  0x2f   :  { %591 = dma.done.wait [#allocation6], 512  }
  0x30   :  { %592 = vsyncadd [#allocation6], 4294966784 }
  0x31   :  { %593 = dma.done.wait [#allocation9], 256  }
  0x32   :  { %594 = vsyncadd [#allocation9], 4294967040  ;;  %v605_v0 = vmov 0.0   ;;  %vm606_vm0 = vmmov 0   ;;  %v442_v1 = vld [vmem:[#allocation5 + $0x8] sm:$0xff]   ;;  %v443_v2 = vld [vmem:[#allocation7 + $0x8] sm:$0xff]  }
  0x33   :  { %407 = vmatprep.subr.bf16.mxu0 %v605_v0  ;;  %415 = vmatprep.subr.bf16.mxu1 %v605_v0  ;;  %v444_v3 = vld [vmem:[#allocation5] sm:$0xff]   ;;  %v445_v4 = vld [vmem:[#allocation7] sm:$0xff]   ;;  %v446_v5 = vld [vmem:[#allocation2] sm:$0xff]   ;;  %vm117_vm1 = vcmask 261120   ;;  %vm300_vm2 = vcmask 257024   ;;  %s607_s10 = smov [#allocation11]  }
  0x34   :  { %411 = vmatprep.mubr.msk.bf16.mxu0 %vm606_vm0, %v605_v0  ;;  %419 = vmatprep.mubr.msk.bf16.mxu1 %vm606_vm0, %v605_v0  ;;  %v447_v6 = vld [vmem:[#allocation8 + $0x8] sm:$0xff]   ;;  %v448_v7 = vld [vmem:[#allocation8] sm:$0xff]   ;;  %v373_v8 = vld [vmem:[%s724_s4] ss:$0 sm:$0xff]  ;;  %s340_s11 = sshll.u32 %s607_s10, 4  ;;  %s609_s16 = smov [#allocation13]   ;;  %s341_s11 = int_to_ptr.vmem [resolvable:$true] %s340_s11 }
  0x35   :  { %408 = vmatpush3.bf16.msra.mxu0 %v442_v1  ;;  %416 = vmatpush3.bf16.msra.mxu1 %v443_v2  ;;  %v378_v9 = vld [vmem:[%s725_s5] ss:$0 sm:$0xff]  ;;  %s608_s5 = smov [#allocation10]   ;;  %s352_s17 = sshll.u32 %s609_s16, 4  ;;  %s353_s17 = int_to_ptr.vmem [resolvable:$true] %s352_s17 }
  0x36   :  { %409 = vmatprep.subr.bf16.mxu0 %v605_v0  ;;  %417 = vmatprep.subr.bf16.mxu1 %v605_v0  ;;  %v382_v24 = vld [vmem:[%s726_s6] ss:$0 sm:$0xff]  ;;  %s328_s13 = sshll.u32 %s608_s5, 4  ;;  %s529_s6 = scalar_lea.vmem %s341_s11, 128  ;;  %s329_s13 = int_to_ptr.vmem [resolvable:$true] %s328_s13 }
  0x37   :  { %p530_p6 = scmp.ne.s32.totalorder %s341_s11, %s529_s6  ;;  %p534_p7 = scmp.lt.s32.totalorder %s341_s11, %s341_s11 }
  0x38   :  { %p535_p8 = scmp.lt.s32.totalorder %s529_s6, %s529_s6 }
  0x39   :  { %410 = vmatpush3.bf16.msra.mxu0 %v444_v3  ;;  %418 = vmatpush3.bf16.msra.mxu1 %v445_v4 }
  0x3a   :  { %423 = vmatprep.subr.bf16.mxu0 %v605_v0  ;;  %p536_p9 = por %p535_p8, %p534_p7 }
  0x3c   :  { %412 = vmatmul.mubr.msk.bf16.vlgmr.msra.gmra.mxu0 %vm117_vm1, %v446_v5  ;;  %420 = vmatmul.mubr.msk.bf16.vlgmr.msra.gmra.mxu1 %vm117_vm1, %v446_v5  ;;  %p537_p10 = pnand %p536_p9, %p530_p6 }
  0x3d   :  { %424 = vmatpush3.bf16.msra.mxu0 %v447_v6  ;;  %427 = vmatprep.mubr.msk.bf16.mxu0 %vm606_vm0, %v605_v0 }
  0x3e   :  { %425 = vmatprep.subr.bf16.mxu0 %v605_v0 }
  0x41   :  { %426 = vmatpush3.bf16.msra.mxu0 %v448_v7 }
  0x44   :  { %428 = vmatmul.mubr.msk.bf16.vlgmr.msra.gmra.mxu0 %vm117_vm1, %v446_v5 }
  0xfc   :  { %v155_v10 = vpop.f32.mrf.mxu0  ;;  %v219_v12 = vpop.f32.mrf.mxu1 }
  0xfd   :  { %v156_v11 = vadd.f32 %v373_v8, %v155_v10  ;;  %v220_v14 = vadd.f32 %v378_v9, %v219_v12 }
  0xfe   :  { %v413_v13 = vpop.f32.mrf.mxu0  ;;  %v421_v16 = vpop.f32.mrf.mxu1 }
  0xff   :  { %v290_v15 = vmul.f32 0.35355338, %v156_v11  ;;  %v394_v17 = vpack.c.bf16 %v220_v14, %v220_v14 }
 0x100   :  { %v158_v18 = vpop.f32.mrf.mxu0  ;;  %v222_v21 = vpop.f32.mrf.mxu1 }
 0x101   :  { %v392_v19 = vpack.c.bf16 %v290_v15, %v290_v15  ;;  %v159_v20 = vadd.f32 %v373_v8, %v158_v18  ;;  %v223_v23 = vadd.f32 %v378_v9, %v222_v21  ;;  %311 = vst.msk [vmem:[#allocation11] sm:$0xf] %vm300_vm2, %v394_v17 }
 0x102   :  { %v414_v22 = vpop.f32.mrf.mxu0  ;;  %v422_v26 = vpop.f32.mrf.mxu1 }
 0x103   :  { %v291_v25 = vmul.f32 0.35355338, %v159_v20  ;;  %301 = vst.msk [vmem:[#allocation10] sm:$0xf] %vm300_vm2, %v392_v19  ;;  %v395_v27 = vpack.c.bf16 %v223_v23, %v223_v23 }
 0x104   :  { %v283_v28 = vpop.f32.mrf.mxu0 }
 0x105   :  { %v393_v29 = vpack.c.bf16 %v291_v25, %v291_v25  ;;  %v284_v30 = vadd.f32 %v382_v24, %v283_v28  ;;  %312 = vst.msk [vmem:[#allocation11 + $0x4] sm:$0xf] %vm300_vm2, %v395_v27 }
 0x106   :  { %v429_v31 = vpop.f32.mrf.mxu0 }
 0x107   :  { %v396_v32 = vpack.c.bf16 %v284_v30, %v284_v30  ;;  %302 = vst.msk [vmem:[#allocation10 + $0x4] sm:$0xf] %vm300_vm2, %v393_v29 }
 0x108   :  { %540 = shalt.err (!%p537_p10)
}
 0x109   :  { %346 = dma.vmem_to_hbm [thread:$0]  %s341_s11, 128, %s728_s8, [#allocation12], %s601_s14, %s601_s14, %s602_s15   ;;  %v286_v33 = vpop.f32.mrf.mxu0 }
 0x10a   :  { %s549_s20 = scalar_lea.vmem %s329_s13, 128  ;;  %p554_p12 = scmp.lt.s32.totalorder %s329_s13, %s329_s13 }
 0x10b   :  { %p550_p11 = scmp.ne.s32.totalorder %s329_s13, %s549_s20  ;;  %p555_p13 = scmp.lt.s32.totalorder %s549_s20, %s549_s20 }
 0x10d   :  { %p556_p0 = por %p555_p13, %p554_p12 }
 0x10f   :  { %p557_p1 = pnand %p556_p0, %p550_p11 }
 0x111   :  { %560 = shalt.err (!%p557_p1)
}
 0x112   :  { %334 = dma.vmem_to_hbm [thread:$0]  %s329_s13, 128, %s727_s7, [#allocation4], %s601_s14, %s601_s14, %s602_s15   ;;  %321 = vst.msk [vmem:[#allocation13] sm:$0xf] %vm300_vm2, %v396_v32  ;;  %v287_v34 = vadd.f32 %v382_v24, %v286_v33  ;;  %v430_v35 = vpop.f32.mrf.mxu0 }
 0x113   :  { %s569_s8 = scalar_lea.vmem %s353_s17, 128  ;;  %p574_p3 = scmp.lt.s32.totalorder %s353_s17, %s353_s17 }
 0x114   :  { %v397_v36 = vpack.c.bf16 %v287_v34, %v287_v34  ;;  %p570_p2 = scmp.ne.s32.totalorder %s353_s17, %s569_s8  ;;  %p575_p4 = scmp.lt.s32.totalorder %s569_s8, %s569_s8 }
 0x116   :  { %322 = vst.msk [vmem:[#allocation13 + $0x4] sm:$0xf] %vm300_vm2, %v397_v36  ;;  %p576_p5 = por %p575_p4, %p574_p3 }
 0x118   :  { %p577_p6 = pnand %p576_p5, %p570_p2 }
 0x11a   :  { %580 = shalt.err (!%p577_p6)
}
 0x11b   :  { %358 = dma.vmem_to_hbm [thread:$0]  %s353_s17, 128, %s729_s9, [#allocation12], %s601_s14, %s601_s14, %s602_s15  }
 0x11c   :  { %595 = dma.done.wait [#allocation4], 128  }
 0x11d   :  { %596 = vsyncadd [#allocation4], 4294967168 }
 0x11e   :  { %597 = dma.done.wait [#allocation12], 256  }
 0x11f   :  { %598 = vsyncadd [#allocation12], 4294967040 }
 0x120   :  { %368 = vsyncpa [#allocation3], 1 }
 0x121   :  { %369 = vsyncpa [#allocation6], 1 }
 0x122   :  { %370 = vsyncpa [#allocation9], 1 }
 0x123   :  { %371 = vsyncpa [#allocation4], 1 }
 0x124   :  { %372 = vsyncpa [#allocation12], 1 }

</bundles_post_ra>
